<compile_context>
chip_gen: v7x
topology: tpu7x:2x2x1
jax: 0.10.0
libtpu: 0.0.40
codegen_flags: <defaults>
</compile_context>

<pallas_src>
import functools
import math

import jax
import jax.numpy as jnp
from jax.experimental import pallas as pl
from jax.experimental.pallas import tpu as pltpu

LOG_SIG_MAX = 2.0
LOG_SIG_MIN = -20.0


# ----------------------------------------------------------------------------
# Kernel
# ----------------------------------------------------------------------------
def _policy_kernel(x_ref, *refs, n_hidden, action_dim, log_sig_min,
                   log_sig_max, use_bf16):
    """Fused policy trunk + (mean | std) head.

    refs = (w0, b0, ..., w_{n_hidden-1}, b_{n_hidden-1}, w_head, b_head, out_ref)
      wi:     [in_i, out_i]  (pre-transposed; bf16 if use_bf16)
      bi:     [1, out_i]     (f32)
      w_head: [H, 2*A]  = [W_mean.T | W_logstd.T]
      out:    [tile, 2*A]  = [mean | std] packed along lanes
    """
    out_ref = refs[-1]
    param_refs = refs[:-1]

    def dense(h, w_ref, b_ref):
        w = w_ref[...]
        b = b_ref[...].astype(jnp.float32)
        lhs = h.astype(jnp.bfloat16) if use_bf16 else h
        return jnp.dot(lhs, w, preferred_element_type=jnp.float32) + b

    h = x_ref[...].astype(jnp.float32)
    for i in range(n_hidden):
        # hidden_activation = F.relu
        h = jnp.maximum(dense(h, param_refs[2 * i], param_refs[2 * i + 1]), 0.0)

    # Fused head: z[:, :A] = mean pre-activation, z[:, A:] = log_std.
    z = dense(h, param_refs[2 * n_hidden], param_refs[2 * n_hidden + 1])

    # std lanes: exp(clamp(log_std)); mean lanes: identity output activation.
    # Pure per-lane select -> no cross-lane data movement, exp goes to the EUP.
    std_all = jnp.exp(jnp.clip(z, log_sig_min, log_sig_max))
    lane = jax.lax.broadcasted_iota(jnp.int32, z.shape, 1)
    out = jnp.where(lane >= action_dim, std_all, z)
    out_ref[...] = out.astype(out_ref.dtype)


# ----------------------------------------------------------------------------
# Wrapper helpers
# ----------------------------------------------------------------------------
def _round_up(x, m):
    return ((x + m - 1) // m) * m


def _vmem_estimate(tile, obs_dim, layer_params, out_width, act_bytes=4):
    widths = [obs_dim] + [w.shape[1] for (w, _) in layer_params]
    max_w = max(widths)
    param_bytes = sum(
        w.size * jnp.dtype(w.dtype).itemsize + b.size * jnp.dtype(b.dtype).itemsize
        for (w, b) in layer_params)
    est = 2 * tile * obs_dim * act_bytes       # double-buffered input blocks
    est += 2 * tile * out_width * act_bytes    # double-buffered output blocks
    est += 2 * param_bytes                     # replicated params (double-buffered)
    est += 4 * tile * max_w * 4                # f32 intermediates headroom
    return est


def _choose_batch_tile(batch, obs_dim, layer_params, out_width, max_tile=512):
    padded = _round_up(batch, 8)
    # Large tiles amortize per-step pipeline overhead; keep >=2 grid steps
    # when the batch allows it so the "parallel" axis can use both v7x TCs.
    tile = min(max_tile, max(8, _round_up(-(-padded // 2), 8)))
    # Shrink if the per-step VMEM footprint would exceed a conservative budget
    # (~24 MiB scoped — safe on v7x's smaller VMEM as well as v5e/v6e).
    while tile > 8 and _vmem_estimate(tile, obs_dim, layer_params, out_width) > 24 * 2**20:
        tile = max(8, _round_up(tile // 2, 8))
    return tile


# ----------------------------------------------------------------------------
# Public forward
# ----------------------------------------------------------------------------
def tanh_gaussian_policy_forward(obs, params, *, batch_tile=None,
                                 use_bf16_matmul=True, max_batch_tile=512):
    """obs: [B, obs_dim].  Returns (mean, std), each [B, action_dim]."""
    hidden_params = list(params["hidden"])
    w_mean, b_mean = params["last_fc"]
    w_log_std, b_log_std = params["last_fc_log_std"]

    B, obs_dim = obs.shape
    action_dim = w_mean.shape[1]
    out_width = 2 * action_dim

    # Fuse the two heads into one matmul: [H, 2A] and [1, 2A].
    w_head = jnp.concatenate([w_mean, w_log_std], axis=1)
    b_head = jnp.concatenate([b_mean, b_log_std], axis=1)
    layer_params = hidden_params + [(w_head, b_head)]

    if use_bf16_matmul:
        # bf16 weights halve weight DMA traffic and feed the bf16 MXU path;
        # biases stay f32 (elementwise path stays f32 for v5e's VPU).
        layer_params = [(w.astype(jnp.bfloat16), b) for (w, b) in layer_params]

    if batch_tile is None:
        batch_tile = _choose_batch_tile(B, obs_dim, layer_params, out_width,
                                        max_tile=max_batch_tile)
    else:
        batch_tile = min(_round_up(batch_tile, 8), _round_up(B, 8))

    grid = (pl.cdiv(B, batch_tile),)

    # x / out are tiled over batch; weights & biases replicated per grid step.
    in_specs = [pl.BlockSpec((batch_tile, obs_dim), lambda i: (i, 0))]
    flat_params = []
    for (w, b) in layer_params:
        in_specs.append(pl.BlockSpec(w.shape, lambda i: (0, 0)))
        in_specs.append(pl.BlockSpec(b.shape, lambda i: (0, 0)))
        flat_params.extend([w, b])
    out_specs = pl.BlockSpec((batch_tile, out_width), lambda i: (i, 0))

    kernel = functools.partial(
        _policy_kernel,
        n_hidden=len(hidden_params),
        action_dim=action_dim,
        log_sig_min=LOG_SIG_MIN,
        log_sig_max=LOG_SIG_MAX,
        use_bf16=use_bf16_matmul,
    )

    itemsize = jnp.dtype(obs.dtype).itemsize
    flops = 2 * B * sum(w.shape[0] * w.shape[1] for (w, _) in layer_params)
    bytes_accessed = (
        obs.size * itemsize
        + B * out_width * itemsize
        + sum(w.size * jnp.dtype(w.dtype).itemsize
              + b.size * jnp.dtype(b.dtype).itemsize for (w, b) in layer_params))
    cost = pl.CostEstimate(flops=flops, transcendentals=B * out_width,
                           bytes_accessed=bytes_accessed)

    vmem_est = _vmem_estimate(batch_tile, obs_dim, layer_params, out_width)
    vmem_limit = int(min(64 * 2**20, max(16 * 2**20, 2 * vmem_est)))

    packed = pl.pallas_call(
        kernel,
        out_shape=jax.ShapeDtypeStruct((B, out_width), obs.dtype),
        grid_spec=pltpu.PrefetchScalarGridSpec(
            num_scalar_prefetch=0,
            grid=grid,
            in_specs=in_specs,
            out_specs=out_specs,
        ),
        compiler_params=pltpu.CompilerParams(
            dimension_semantics=("parallel",),
            vmem_limit_bytes=vmem_limit,
        ),
        cost_estimate=cost,
    )(obs, *flat_params)

    mean = packed[:, :action_dim]
    std = packed[:, action_dim:]
    return mean, std


# ----------------------------------------------------------------------------
# Deterministic parameter init (mirrors TanhGaussianPolicy.__init__)
# ----------------------------------------------------------------------------
def init_policy_params(key, obs_dim, action_dim, hidden_sizes, init_w=1e-3,
                       b_init_value=0.0, dtype=jnp.float32):
    hidden = []
    in_size = obs_dim
    for next_size in hidden_sizes:
        key, wk = jax.random.split(key)
        bound = 1.0 / math.sqrt(in_size)                 # ptu.fanin_init
        w_t = jax.random.uniform(wk, (in_size, next_size), dtype, -bound, bound)
        b = jnp.full((1, next_size), b_init_value, dtype)
        hidden.append((w_t, b))
        in_size = next_size
    key, k1, k2, k3 = jax.random.split(key, 4)
    w_mean = jax.random.uniform(k1, (in_size, action_dim), dtype, -init_w, init_w)
    b_mean = jnp.zeros((1, action_dim), dtype)
    w_log_std = jax.random.uniform(k2, (in_size, action_dim), dtype, -init_w, init_w)
    b_log_std = jax.random.uniform(k3, (1, action_dim), dtype, -init_w, init_w)
    return {"hidden": hidden,
            "last_fc": (w_mean, b_mean),
            "last_fc_log_std": (w_log_std, b_log_std)}


# Pure-JAX reference (mirrors the kernel's bf16-operand / f32-accumulate math)
def policy_reference(obs, params, use_bf16_matmul=True):
    def dense(h, w, b):
        if use_bf16_matmul:
            return jnp.dot(h.astype(jnp.bfloat16), w.astype(jnp.bfloat16),
                           preferred_element_type=jnp.float32) + b
        return h @ w + b

    h = obs.astype(jnp.float32)
    for (w, b) in params["hidden"]:
        h = jnp.maximum(dense(h, w, b), 0.0)
    mean = dense(h, *params["last_fc"])
    log_std = dense(h, *params["last_fc_log_std"])
    std = jnp.exp(jnp.clip(log_std, LOG_SIG_MIN, LOG_SIG_MAX))
    return mean, std


if __name__ == "__main__":
    key = jax.random.PRNGKey(0)
    B, obs_dim, action_dim = 16, 32, 16
    hidden_sizes = (64, 64)

    key, ok, pk = jax.random.split(key, 3)
    obs = jax.random.normal(ok, (B, obs_dim), jnp.float32)
    params = init_policy_params(pk, obs_dim, action_dim, hidden_sizes)

    mean, std = tanh_gaussian_policy_forward(obs, params)
    mean = jax.block_until_ready(mean)
    std = jax.block_until_ready(std)

    mean_ref, std_ref = policy_reference(obs, params)
    assert mean.shape == (B, action_dim) and std.shape == (B, action_dim)
    assert jnp.allclose(mean, mean_ref, atol=2e-3, rtol=2e-3), "mean mismatch"
    assert jnp.allclose(std, std_ref, atol=2e-3, rtol=2e-3), "std mismatch"
    assert bool(jnp.all(std > 0)), "std must be positive"

    print("KERNEL_OK")
</pallas_src>

<mosaic_0001>
module attributes {stable_mosaic.version = 11 : i64} {
  func.func @_policy_kernel(%arg0: i32, %arg1: memref<8x32xf32, #tpu.memory_space<vmem>>, %arg2: memref<32x64xbf16, #tpu.memory_space<vmem>>, %arg3: memref<1x64xf32, #tpu.memory_space<vmem>>, %arg4: memref<64x64xbf16, #tpu.memory_space<vmem>>, %arg5: memref<1x64xf32, #tpu.memory_space<vmem>>, %arg6: memref<64x32xbf16, #tpu.memory_space<vmem>>, %arg7: memref<1x32xf32, #tpu.memory_space<vmem>>, %arg8: memref<8x32xf32, #tpu.memory_space<vmem>>) attributes {dimension_semantics = [#tpu.dimension_semantics<parallel>], iteration_bounds = array<i64: 2>, scalar_prefetch = 0 : i64, scratch_operands = 0 : i64, tpu.core_type = #tpu.core_type<tc>, window_params = [{transform_indices = @transform_0, window_bounds = array<i64: 8, 32>}, {pipeline_mode = #tpu.pipeline_mode<synchronous>, transform_indices = @transform_1, window_bounds = array<i64: 32, 64>}, {pipeline_mode = #tpu.pipeline_mode<synchronous>, transform_indices = @transform_2, window_bounds = array<i64: 1, 64>}, {pipeline_mode = #tpu.pipeline_mode<synchronous>, transform_indices = @transform_3, window_bounds = array<i64: 64, 64>}, {pipeline_mode = #tpu.pipeline_mode<synchronous>, transform_indices = @transform_4, window_bounds = array<i64: 1, 64>}, {pipeline_mode = #tpu.pipeline_mode<synchronous>, transform_indices = @transform_5, window_bounds = array<i64: 64, 32>}, {pipeline_mode = #tpu.pipeline_mode<synchronous>, transform_indices = @transform_6, window_bounds = array<i64: 1, 32>}, {transform_indices = @transform_7, window_bounds = array<i64: 8, 32>}]} {
    %c0 = arith.constant 0 : index
    %c0_0 = arith.constant 0 : index
    %0 = vector.load %arg1[%c0, %c0_0] : memref<8x32xf32, #tpu.memory_space<vmem>>, vector<8x32xf32>
    %c0_1 = arith.constant 0 : index
    %c0_2 = arith.constant 0 : index
    %1 = vector.load %arg2[%c0_1, %c0_2] : memref<32x64xbf16, #tpu.memory_space<vmem>>, vector<32x64xbf16>
    %c0_3 = arith.constant 0 : index
    %c0_4 = arith.constant 0 : index
    %2 = vector.load %arg3[%c0_3, %c0_4] : memref<1x64xf32, #tpu.memory_space<vmem>>, vector<1x64xf32>
    %3 = arith.truncf %0 : vector<8x32xf32> to vector<8x32xbf16>
    %cst = arith.constant dense<0.000000e+00> : vector<8x64xf32>
    %4 = tpu.matmul %3, %1, %cst {dimension_numbers = #tpu.dot_dimension_numbers<[1], [0], [0], [1], [0, 0, 1, 1], [], []>} : vector<8x32xbf16>, vector<32x64xbf16>, vector<8x64xf32> -> vector<8x64xf32>
    %5 = vector.broadcast %2 : vector<1x64xf32> to vector<8x64xf32>
    %6 = arith.addf %4, %5 : vector<8x64xf32>
    %cst_5 = arith.constant 0.000000e+00 : f32
    %7 = vector.broadcast %cst_5 : f32 to vector<8x64xf32>
    %8 = arith.maximumf %6, %7 : vector<8x64xf32>
    %c0_6 = arith.constant 0 : index
    %c0_7 = arith.constant 0 : index
    %9 = vector.load %arg4[%c0_6, %c0_7] : memref<64x64xbf16, #tpu.memory_space<vmem>>, vector<64x64xbf16>
    %c0_8 = arith.constant 0 : index
    %c0_9 = arith.constant 0 : index
    %10 = vector.load %arg5[%c0_8, %c0_9] : memref<1x64xf32, #tpu.memory_space<vmem>>, vector<1x64xf32>
    %11 = arith.truncf %8 : vector<8x64xf32> to vector<8x64xbf16>
    %cst_10 = arith.constant dense<0.000000e+00> : vector<8x64xf32>
    %12 = tpu.matmul %11, %9, %cst_10 {dimension_numbers = #tpu.dot_dimension_numbers<[1], [0], [0], [1], [0, 0, 1, 1], [], []>} : vector<8x64xbf16>, vector<64x64xbf16>, vector<8x64xf32> -> vector<8x64xf32>
    %13 = vector.broadcast %10 : vector<1x64xf32> to vector<8x64xf32>
    %14 = arith.addf %12, %13 : vector<8x64xf32>
    %cst_11 = arith.constant 0.000000e+00 : f32
    %15 = vector.broadcast %cst_11 : f32 to vector<8x64xf32>
    %16 = arith.maximumf %14, %15 : vector<8x64xf32>
    %c0_12 = arith.constant 0 : index
    %c0_13 = arith.constant 0 : index
    %17 = vector.load %arg6[%c0_12, %c0_13] : memref<64x32xbf16, #tpu.memory_space<vmem>>, vector<64x32xbf16>
    %c0_14 = arith.constant 0 : index
    %c0_15 = arith.constant 0 : index
    %18 = vector.load %arg7[%c0_14, %c0_15] : memref<1x32xf32, #tpu.memory_space<vmem>>, vector<1x32xf32>
    %19 = arith.truncf %16 : vector<8x64xf32> to vector<8x64xbf16>
    %cst_16 = arith.constant dense<0.000000e+00> : vector<8x32xf32>
    %20 = tpu.matmul %19, %17, %cst_16 {dimension_numbers = #tpu.dot_dimension_numbers<[1], [0], [0], [1], [0, 0, 1, 1], [], []>} : vector<8x64xbf16>, vector<64x32xbf16>, vector<8x32xf32> -> vector<8x32xf32>
    %21 = vector.broadcast %18 : vector<1x32xf32> to vector<8x32xf32>
    %22 = arith.addf %20, %21 : vector<8x32xf32>
    %cst_17 = arith.constant -2.000000e+01 : f32
    %cst_18 = arith.constant 2.000000e+00 : f32
    %23 = vector.broadcast %cst_17 : f32 to vector<8x32xf32>
    %24 = arith.maximumf %23, %22 : vector<8x32xf32>
    %25 = vector.broadcast %cst_18 : f32 to vector<8x32xf32>
    %26 = arith.minimumf %25, %24 : vector<8x32xf32>
    %27 = math.exp %26 : vector<8x32xf32>
    %28 = tpu.iota {dimensions = array<i32: 1>} : vector<8x32xi32>
    %c16_i32 = arith.constant 16 : i32
    %29 = vector.broadcast %c16_i32 : i32 to vector<8x32xi32>
    %30 = arith.cmpi sge, %28, %29 : vector<8x32xi32>
    %31 = arith.select %30, %27, %22 : vector<8x32xi1>, vector<8x32xf32>
    %c0_19 = arith.constant 0 : index
    %c0_20 = arith.constant 0 : index
    %32 = vector.load %arg8[%c0_19, %c0_20] : memref<8x32xf32, #tpu.memory_space<vmem>>, vector<8x32xf32>
    tpu.vector_store %arg8[%c0_19, %c0_20], %31 {strides = array<i32>} : memref<8x32xf32, #tpu.memory_space<vmem>>, vector<8x32xf32>,
    return
  }
  func.func @transform_0(%arg0: i32) -> (i32, i32) {
    %c0_i32 = arith.constant 0 : i32
    %c0_i32_0 = arith.constant 0 : i32
    return %arg0, %c0_i32 : i32, i32
  }
  func.func @transform_1(%arg0: i32) -> (i32, i32) {
    %c0_i32 = arith.constant 0 : i32
    %c0_i32_0 = arith.constant 0 : i32
    %c0_i32_1 = arith.constant 0 : i32
    return %c0_i32, %c0_i32_0 : i32, i32
  }
  func.func @transform_2(%arg0: i32) -> (i32, i32) {
    %c0_i32 = arith.constant 0 : i32
    %c0_i32_0 = arith.constant 0 : i32
    %c0_i32_1 = arith.constant 0 : i32
    return %c0_i32, %c0_i32_0 : i32, i32
  }
  func.func @transform_3(%arg0: i32) -> (i32, i32) {
    %c0_i32 = arith.constant 0 : i32
    %c0_i32_0 = arith.constant 0 : i32
    %c0_i32_1 = arith.constant 0 : i32
    return %c0_i32, %c0_i32_0 : i32, i32
  }
  func.func @transform_4(%arg0: i32) -> (i32, i32) {
    %c0_i32 = arith.constant 0 : i32
    %c0_i32_0 = arith.constant 0 : i32
    %c0_i32_1 = arith.constant 0 : i32
    return %c0_i32, %c0_i32_0 : i32, i32
  }
  func.func @transform_5(%arg0: i32) -> (i32, i32) {
    %c0_i32 = arith.constant 0 : i32
    %c0_i32_0 = arith.constant 0 : i32
    %c0_i32_1 = arith.constant 0 : i32
    return %c0_i32, %c0_i32_0 : i32, i32
  }
  func.func @transform_6(%arg0: i32) -> (i32, i32) {
    %c0_i32 = arith.constant 0 : i32
    %c0_i32_0 = arith.constant 0 : i32
    %c0_i32_1 = arith.constant 0 : i32
    return %c0_i32, %c0_i32_0 : i32, i32
  }
  func.func @transform_7(%arg0: i32) -> (i32, i32) {
    %c0_i32 = arith.constant 0 : i32
    %c0_i32_0 = arith.constant 0 : i32
    return %arg0, %c0_i32 : i32, i32
  }
}

</mosaic_0001>

<bundles_post_ra>
// kernel: tpu_custom_call.1
= control target key start
LH: loop header
LB: loop body
LE: loop exit
PB: predicated region body
PF: predicated region fallthrough
CT: control target
= control target key end

     0   :  { %12 = vsyncpa [#allocation3], 0  ;;  %s1078_s0 = inlined_call_operand.vmem [shape: f32[16,32], index: 0, kind: input, shape index: {}]   ;;  %s1079_s1 = inlined_call_operand.hbm [shape: bf16[32,64], index: 1, kind: input, shape index: {}]   ;;  %s1080_s2 = inlined_call_operand.vmem [shape: f32[1,64], index: 2, kind: input, shape index: {}]   ;;  %s1081_s3 = inlined_call_operand.vmem [shape: bf16[64,64], index: 3, kind: input, shape index: {}]   ;;  %s1082_s4 = inlined_call_operand.vmem [shape: f32[1,64], index: 4, kind: input, shape index: {}]   ;;  %s1083_s5 = inlined_call_operand.vmem [shape: bf16[64,32], index: 5, kind: input, shape index: {}]   ;;  %s1084_s6 = inlined_call_operand.vmem [shape: f32[1,32], index: 6, kind: input, shape index: {}]   ;;  %s1085_s7 = inlined_call_operand.hbm [shape: f32[16,32], index: 7, kind: output, shape index: {}]  }
   0x1   :  { %13 = vsyncpa [#allocation4], 0 }
   0x2   :  { %15 = vsyncpa [#allocation4 + $0x1], 0  ;;  %s903_s24 = smov 0   ;;  %s905_s25 = smov 0  }
   0x3   :  { %s907_s26 = smov 0   ;;  %s909_s27 = smov 0  }
   0x4 LB: > { %s924_s28 = sadd.s32 4294967295, %s855_s27   ;;  %s622_s29 = sadd.s32 4294967294, %s855_s27   ;;  %s855_s27 = sphi %s909_s27, %s1101_s27   ;;  %s851_s26 = sphi %s907_s26, %s1100_s26   ;;  %s847_s25 = sphi %s905_s25, %s1099_s25   ;;  %s843_s24 = sphi %s903_s24, %s1098_s24  }
   0x5   : > { %s928_s30 = sadd.s32 1, %s855_s27   ;;  %s180_s8 = sadd.s32 1, %s851_s26 }
   0x6   : > { %s177_s9 = ssub.s32 %s855_s27, %s928_s30  ;;  %p190_p0 = scmp.ne.s32.totalorder %s851_s26, %s847_s25 }
   0x7   : > { %p178_p1 = scmp.eq.s32.totalorder %s177_s9, 0  ;;  %p191_p2 = scmp.eq.s32.totalorder %s924_s28, 1 }
   0x8   : > { %p196_p3 = scmp.ne.s32.totalorder %s847_s25, %s843_s24  ;;  %p197_p4 = scmp.eq.s32.totalorder %s622_s29, 1 }
   0x9   : > { %s939_s10 = scalar_select %p178_p1, %s851_s26, %s180_s8  }
   0xa   : > { %p941_p5 = por %p191_p2, %p190_p0  ;;  %p945_p6 = por %p197_p4, %p196_p3 }
   0xb   : > { %p623_p7 = scmp.ge.s32.totalorder %s855_s27, 1  ;;  %p204_p8 = scmp.lt.s32.totalorder %s855_s27, 3 }
   0xc   : > { %s1089_s11 = scalar_select %p941_p5, 1, 0 }
   0xd   : > { %s1090_s12 = scalar_select %p945_p6, 1, 0 }
   0xe   : > { %p1086_p9 = scmp.eq.s32.totalorder %s924_s28, 0  ;;  %p952_p10 = pnand %p623_p7, %p204_p8 }
   0xf   : > { %s857_s14 = smov [#allocation2]   ;;  %s761_s19 = scalar_lea.hbm %s1079_s1, 256 }
  0x10   : > { %s1091_s13 = scalar_select %p952_p10, 1, 0 }
  0x11   : > { %s216_s15 = sshll.u32 %s857_s14, 4  ;;  %p701_p11 = pneg %p952_p10  ;;  %s217_s15 = int_to_ptr.vmem [resolvable:$true] %s216_s15 }
  0x12   : > { %p762_p13 = scmp.ne.s32.totalorder %s1079_s1, %s761_s19  ;;  %p768_p3 = scmp.lt.u32.totalorder %s761_s19, %s1079_s1 }
  0x13   : > { %p960_p12 = pnand %p1086_p9, %p701_p11 }
  0x15   : > { %p763_p0 = pneg %p960_p12 }
  0x17   : > { %p764_p1 = pnand %p763_p0, %p762_p13 }
  0x19   : > { %p765_p2 = pneg %p764_p1 }
  0x1b   : > { %p770_p4 = pnand %p768_p3, %p765_p2 }
  0x1d   : > { %773 = shalt.err (!%p770_p4)
}
  0x1e   : > { %s774_s29 = scalar_lea.vmem %s217_s15, 256  ;;  %p782_p9 = scmp.lt.s32.totalorder %s217_s15, %s217_s15 }
  0x1f   : > { %p775_p7 = scmp.ne.s32.totalorder %s217_s15, %s774_s29  ;;  %p783_p6 = scmp.lt.s32.totalorder %s774_s29, %s774_s29 }
  0x21   : > { %p777_p8 = pnand %p775_p7, %p763_p0  ;;  %p784_p5 = por %p783_p6, %p782_p9 }
  0x23   : > { %p778_p11 = pneg %p777_p8 }
  0x25   : > { %p785_p10 = pnand %p784_p5, %p778_p11 }
  0x27   : > { %788 = shalt.err (!%p785_p10)
}
  0x28   : > { %s858_s8 = smov 64   ;;  %s859_s9 = smov 4  }
  0x29   : > { %704 = dma.hbm_to_vmem [thread:$0]  (!%p960_p12), %s1079_s1, 256, %s217_s15, [#allocation3], %s858_s8, %s858_s8, %s859_s9  }
  0x2a   : > { %p1093_p13 = scmp.ne.s32.totalorder %s1091_s13, 0 }
  0x2b   : > { %p1094_p1 = scmp.eq.s32.totalorder (!%p1093_p13), %s924_s28, 0 }
  0x2c   : > { %254 = sbr.rel (%p1093_p13) target bundleno = 744 (0x2e8), region = 48 }
  0x33   : > { %834 = dma.done.wait (%p1094_p1), [#allocation3], 256   ;;  %p1095_p0 = pmov %p1094_p1 }
  0x34   : > { %p285_p5 = scmp.lt.s32.totalorder %s924_s28, 1  ;;  %v860_v0 = vmov 0.0   ;;  %vm861_vm0 = vmmov 0   ;;  %v749_v1 = vld [vmem:[#allocation2] sm:$0xff]   ;;  %v750_v2 = vld [vmem:[#allocation2 + $0x8] sm:$0xff]   ;;  %vm315_vm1 = vcmask 261120   ;;  %v532_v38 = vlaneseq }
  0x35   : > { %836 = vsyncadd (%p1095_p0), [#allocation3], 4294967040  ;;  %663 = vmatprep.subr.bf16.mxu0 %v860_v0  ;;  %667 = vmatprep.mubr.msk.bf16.mxu0 %vm861_vm0, %v860_v0  ;;  %v751_v4 = vld [vmem:[%s1081_s3] sm:$0xff]   ;;  %v752_v5 = vld [vmem:[%s1081_s3 + $0x8] sm:$0xff]   ;;  %vm400_vm2 = vcmask 523264   ;;  %s282_s17 = sand.u32 1, %s847_s25  }
  0x36   : > { %s286_s16 = scalar_select %p285_p5, %s924_s28, 1  ;;  %671 = vmatprep.subr.bf16.mxu1 %v860_v0  ;;  %679 = vmatprep.mubr.msk.bf16.mxu1 %vm861_vm0, %v860_v0  ;;  %v753_v7 = vld [vmem:[%s1081_s3 + $0x10] sm:$0xff]   ;;  %v754_v8 = vld [vmem:[%s1081_s3 + $0x18] sm:$0xff]   ;;  %v755_v9 = vld [vmem:[%s1083_s5] sm:$0xff]   ;;  %v533_v39 = vand.u32 127, %v532_v38 }
  0x37   : > { %664 = vmatpush3.bf16.msra.mxu0 %v749_v1  ;;  %672 = vmatpush3.bf16.msra.mxu1 %v751_v4  ;;  %v756_v10 = vld [vmem:[%s1083_s5 + $0x8] sm:$0xff]   ;;  %v630_v11 = vld [vmem:[%s1080_s2] ss:$0 sm:$0xff]  ;;  %v757_v19 = vld [vmem:[%s1083_s5 + $0x10] sm:$0xff]   ;;  %s538_s22 = scalar_lea.sflag [#allocation4], %s282_s17  ;;  %p1096_p9 = scmp.ne.s32.totalorder %s1089_s11, 0 }
  0x38   : > { %s629_s13 = sshll.u32 %s286_s16, 3  ;;  %665 = vmatprep.subr.bf16.mxu0 %v860_v0  ;;  %673 = vmatprep.subr.bf16.mxu1 %v860_v0  ;;  %v758_v20 = vld [vmem:[%s1083_s5 + $0x18] sm:$0xff]   ;;  %v634_v21 = vld [vmem:[%s1082_s4] ss:$0 sm:$0xff]  ;;  %s628_s16 = sshll.u32 %s282_s17, 3  ;;  %vm534_vm3 = vcmp.ge.s32.totalorder %v533_v39, 16 }
  0x39   : > { %s288_s19 = scalar_lea.vmem %s1078_s0, %s629_s13  ;;  %v640_v29 = vld [vmem:[%s1084_s6] ss:$0 sm:$0xff]  ;;  %s647_s13 = sshll.u32 %s924_s28, 7 }
  0x3a   : > { %v290_v3 = vld [vmem:[%s288_s19] sm:$0xff]  ;;  %s284_s15 = scalar_lea.vmem [#allocation5], %s628_s16  ;;  %s1035_s21 = scalar_lea.hbm %s1085_s7, %s647_s13 }
  0x3b   : > { %v296_v6 = vpack.c.bf16 %v290_v3, %v290_v3  ;;  %666 = vmatpush3.bf16.msra.mxu0 %v750_v2  ;;  %674 = vmatpush3.bf16.msra.mxu1 %v752_v5  ;;  %s551_s18 = sshll.u32 %s284_s15, 4  ;;  %s862_s28 = smov [#allocation5]   ;;  %s1037_s18 = int_to_ptr.vmem [resolvable:$true] %s551_s18 }
  0x3c   : > { %683 = vmatprep.subr.bf16.mxu0 %v860_v0  ;;  %675 = vmatprep.subr.bf16.mxu1 %v860_v0  ;;  %s789_s23 = scalar_lea.vmem %s1037_s18, 128  ;;  %s793_s29 = sshll.u32 %s862_s28, 4  ;;  %s794_s29 = int_to_ptr.vmem [resolvable:$false] %s793_s29 }
  0x3d   : > { %p790_p6 = scmp.ne.s32.totalorder %s1037_s18, %s789_s23  ;;  %s795_s8 = scalar_lea.vmem %s794_s29, 256 }
  0x3e   : > { %668 = vmatmul.mubr.msk.bf16.vlgmr.msra.gmra.mrb[0].mxu0 %vm315_vm1, %v296_v6  ;;  %p796_p2 = scmp.lt.s32.totalorder %s1037_s18, %s794_s29  ;;  %p797_p3 = scmp.lt.s32.totalorder %s795_s8, %s789_s23 }
  0x3f   : > { %691 = vmatprep.mubr.msk.bf16.mxu0 %vm861_vm0, %v860_v0  ;;  %676 = vmatpush3.bf16.msra.mxu1 %v753_v7  ;;  %p791_p10 = pnand %p790_p6, %p1096_p9 }
  0x40   : > { %677 = vmatprep.subr.bf16.mxu1 %v860_v0  ;;  %684 = vmatpush3.bf16.msra.mxu0 %v755_v9  ;;  %p798_p4 = por %p797_p3, %p796_p2 }
  0x41   : > { %685 = vmatprep.subr.bf16.mxu0 %v860_v0  ;;  %p792_p12 = pneg %p791_p10 }
  0x43   : > { %678 = vmatpush3.bf16.msra.mxu1 %v754_v8  ;;  %p799_p7 = pnand %p798_p4, %p792_p12 }
  0x44   : > { %686 = vmatpush3.bf16.msra.mxu0 %v756_v10 }
  0x45   : > { %687 = vmatprep.subr.bf16.mxu0 %v860_v0 }
  0x48   : > { %688 = vmatpush3.bf16.msra.mxu0 %v757_v19 }
  0x49   : > { %689 = vmatprep.subr.bf16.mxu0 %v860_v0 }
  0x4c   : > { %690 = vmatpush3.bf16.msra.mxu0 %v758_v20 }
 0x111   : > { %v353_v12 = vpop.f32.mrb[0].mxu0 }
 0x112   : > { %v354_v13 = vadd.f32 %v630_v11, %v353_v12  ;;  %v669_v14 = vpop.f32.mrb[1].mxu0 }
 0x113   : > { %v356_v15 = vpop.f32.mrb[2].mxu0 }
 0x114   : > { %v359_v16 = vmax.f32 %v354_v13, 0.0  ;;  %v670_v17 = vpop.f32.mrb[3].mxu0 }
 0x116   : > { %v369_v18 = vpack.c.bf16 %v359_v16, %v359_v16 }
 0x118   : > { %680 = vmatmul.mubr.msk.bf16.vlgmr.msra.gmra.mrb[0].mxu1 %vm400_vm2, %v369_v18 }
 0x1eb   : > { %v438_v22 = vpop.f32.mrb[0].mxu1 }
 0x1ec   : > { %v439_v23 = vadd.f32 %v634_v21, %v438_v22  ;;  %v681_v24 = vpop.f32.mrb[1].mxu1 }
 0x1ed   : > { %v441_v25 = vpop.f32.mrb[2].mxu1 }
 0x1ee   : > { %v444_v26 = vmax.f32 %v439_v23, 0.0  ;;  %v682_v27 = vpop.f32.mrb[3].mxu1 }
 0x1f0   : > { %v454_v28 = vpack.c.bf16 %v444_v26, %v444_v26 }
 0x1f2   : > { %692 = vmatmul.mubr.msk.bf16.vlgmr.msra.gmra.mrb[4].mxu0 %vm400_vm2, %v454_v28 }
 0x2c5   : > { %v522_v30 = vpop.f32.mrb[4].mxu0 }
 0x2c6   : > { %v523_v31 = vadd.f32 %v640_v29, %v522_v30  ;;  %v693_v32 = vpop.f32.mrb[5].mxu0 }
 0x2c7   : > { %v525_v33 = vpop.f32.mrb[6].mxu0 }
 0x2c8   : > { %v528_v34 = vmax.f32 %v523_v31, -20.0  ;;  %v694_v35 = vpop.f32.mrb[7].mxu0 }
 0x2ca   : > { %v529_v36 = vmin.f32 %v528_v34, 2.0 }
 0x2cc   : > { %v530_v37 = vmul.f32 1.442695, %v529_v36 }
 0x2ce   : > { %759 = vpow2.f32 %v530_v37 }
 0x2d8   : > { %v760_v40 = vpop.eup %759 }
 0x2d9   : > { %v535_v41 = vsel %vm534_vm3, %v760_v40, %v523_v31 }
 0x2da   : > { %536 = vst.msk [vmem:[%s284_s15] sm:$0xff] %vm315_vm1, %v535_v41 }
 0x2db   : > { %802 = shalt.err (!%p799_p7)
}
 0x2dc   : > { %s803_s9 = scalar_lea.hbm %s1035_s21, 128  ;;  %s807_s16 = scalar_lea.hbm %s1085_s7, 256 }
 0x2dd   : > { %p804_p8 = scmp.ne.s32.totalorder %s1035_s21, %s803_s9  ;;  %p808_p1 = scmp.lt.u32.totalorder %s1035_s21, %s1085_s7 }
 0x2de   : > { %p809_p0 = scmp.lt.u32.totalorder %s807_s16, %s803_s9  ;;  %p811_p6 = scmp.lt.u32.totalorder %s803_s9, %s1035_s21 }
 0x2df   : > { %p805_p11 = pnand %p804_p8, %p1096_p9 }
 0x2e0   : > { %p810_p5 = por %p809_p0, %p808_p1 }
 0x2e1   : > { %p806_p13 = pneg %p805_p11 }
 0x2e2   : > { %p812_p10 = por %p811_p6, %p810_p5 }
 0x2e4   : > { %p813_p12 = pnand %p812_p10, %p806_p13 }
 0x2e6   : > { %816 = shalt.err (!%p813_p12)
}
 0x2e7   : > { %699 = dma.vmem_to_hbm [thread:$0]  (%p1096_p9), %s1037_s18, 128, %s1035_s21, %s538_s22  }
 0x2e8 PF: > { %p711_p2 = scmp.ge.s32.totalorder %s855_s27, 2  ;;  %s563_s19 = sand.u32 1, %s843_s24  }
 0x2e9   : > { %p1097_p3 = scmp.ne.s32.totalorder %s1090_s12, 0  ;;  %s564_s20 = scalar_lea.sflag [#allocation4], %s563_s19 }
 0x2eb   : > { %p706_p4 = pnand %p711_p2, %p1097_p3 }
 0x2ed   : > { %838 = dma.done.wait (!%p706_p4), %s564_s20, 128  }
 0x2ee   : > { %840 = vsyncadd (!%p706_p4), %s564_s20, 4294967168  ;;  %p18_p7 = scmp.ge.s32.totalorder %s928_s30, 4   ;;  %s1098_s24 = smov %s847_s25 }
 0x2ef   : > { %s1099_s25 = smov %s851_s26  ;;  %s1100_s26 = smov %s939_s10 }
 0x2f0   : > { %s1101_s27 = smov %s928_s30  ;;  %20 = sbr.rel (!%p18_p7) target bundleno = 4 (0x4), region = 88 }
 0x2f7   :  { %569 = vsyncpa [#allocation3], 1 }
 0x2f8   :  { %571 = vsyncpa [#allocation3 + $0x1], 1 }
 0x2f9   :  { %572 = vsyncpa [#allocation4], 1 }
 0x2fa   :  { %574 = vsyncpa [#allocation4 + $0x1], 1 }

</bundles_post_ra>
